<compile_context>
chip_gen: v7x
topology: tpu7x:2x2x1
jax: 0.10.0
libtpu: 0.0.40
codegen_flags: <defaults>
</compile_context>

<pallas_src>
import functools

import jax
import jax.numpy as jnp
from jax.experimental import pallas as pl
from jax.experimental.pallas import tpu as pltpu


def _seponet_kernel(x_ref, w_ref, m_ref, o_ref, *, img_w, cin, cinp, n_imgs):
    # x_ref : (B, Cin, L)     raw flattened images, L = lane-padded H*W
    # w_ref : (Cout, 9*CinP)  fused (depthwise x pointwise) weight (+ bias col)
    # m_ref : (4, L)          border masks [left, right, top, bot] as 0/1 f32
    # o_ref : (B, Cout, L)    conv output, packed NCHW
    L = x_ref.shape[-1]
    f32 = jnp.float32

    # Per-output-lane border-validity masks (shared by all images / taps).
    m_left = m_ref[0:1, :]    # tap reads column w-1 -> needs w >= 1
    m_right = m_ref[1:2, :]   # tap reads column w+1 -> needs w <= W-2
    m_top = m_ref[2:3, :]     # tap reads row    h-1 -> needs h >= 1
    m_bot = m_ref[3:4, :]     # tap reads row    h+1 -> needs h <= H-2

    # Rows appended to every image: row 0 is the all-ones "bias lane" (its
    # fused-weight column holds the bias), the rest are zero padding that makes
    # each tap group exactly CinP (8-aligned) rows tall.
    pad_rows = cinp - cin
    ones_row = jnp.ones((1, L), f32)
    if pad_rows > 1:
        extra = jnp.concatenate(
            [ones_row, jnp.zeros((pad_rows - 1, L), f32)], axis=0)
    else:
        extra = ones_row

    for b in range(n_imgs):  # unrolled: B images share one grid step's overhead
        x = x_ref[b].astype(f32)                          # (Cin, L)
        xp = jnp.concatenate([x, extra], axis=0)          # (CinP, L)

        # Row-shifted slabs (XLU lane rolls), h-masked per slab.  Masked lanes
        # never read wrapped/out-of-image values.
        top = pltpu.roll(xp, shift=img_w % L, axis=1) * m_top        # row h-1
        bot = pltpu.roll(xp, shift=(L - img_w) % L, axis=1) * m_bot  # row h+1
        s = jnp.concatenate([top, xp, bot], axis=0)       # (3*CinP, L), kh-major

        # Column-shifted copies of the whole stack, w-masked at the output lane.
        left = pltpu.roll(s, shift=1, axis=1) * m_left           # col w-1
        right = pltpu.roll(s, shift=(L - 1) % L, axis=1) * m_right  # col w+1

        # im2col block, kw-major groups of CinP rows each (matches w_fused).
        xcol = jnp.concatenate([left, s, right], axis=0)  # (9*CinP, L)

        # One fused MXU matmul: conv taps, channel mixing and bias in one pass.
        acc = jnp.dot(w_ref[...], xcol, preferred_element_type=jnp.float32)
        o_ref[b] = acc.astype(o_ref.dtype)


def _choose_images_per_step(n):
    """Batch images per grid step (amortize fixed step cost) while keeping
    >= 2 grid steps when possible (pipelining + v7x megacore)."""
    if n <= 1:
        return 1
    for b in (8, 4, 2, 1):
        if n % b == 0 and n // b >= 2:
            return b
    return 1


@jax.jit
def seponet_forward(x_nchw, w_dw, b_dw, w_pw, b_pw):
    """SepONet.forward: 3x3 conv with groups=Cin, then 1x1 conv (both biased).

    x_nchw: (N, Cin, H, W) f32
    w_dw  : (Cout, 1, 3, 3), b_dw: (Cout,)     -- spatial_conv params
    w_pw  : (Cout, Cout, 1, 1), b_pw: (Cout,)  -- point_conv params
    returns (N, Cout, H, W) f32
    """
    N, Cin, H, W = x_nchw.shape
    Cout = w_dw.shape[0]
    if Cout % Cin != 0:
        raise ValueError("out_channels must be a multiple of in_channels")
    mult = Cout // Cin

    HW = H * W
    L = ((HW + 127) // 128) * 128        # lane-padded spatial extent
    CinP = ((Cin + 1 + 7) // 8) * 8      # channels + bias row, 8-row aligned
    K = 9 * CinP

    # ---- input packing: free reshape (lane pad only when HW % 128 != 0) ----
    x_flat = x_nchw.reshape(N, Cin, HW).astype(jnp.float32)
    if L != HW:
        x_flat = jnp.pad(x_flat, ((0, 0), (0, 0), (0, L - HW)))

    # ---- offline fusion: pointwise o grouped-depthwise -> one dense matmul ----
    wp = w_pw[:, :, 0, 0].astype(jnp.float32)            # (Cout, Cout)
    wd = w_dw[:, 0, :, :].astype(jnp.float32)            # (Cout, 3, 3)
    # grouped conv: output channel co reads input channel ci = co // mult
    onehot = (jnp.arange(Cin)[:, None] == (jnp.arange(Cout) // mult)[None, :])
    w4 = jnp.einsum("oc,chw,ic->ohwi", wp, wd,
                    onehot.astype(jnp.float32))          # (Cout, 3, 3, Cin)
    b_fused = wp @ b_dw.astype(jnp.float32) + b_pw.astype(jnp.float32)

    w_pad = jnp.zeros((Cout, 3, 3, CinP), jnp.float32).at[:, :, :, :Cin].set(w4)
    w_pad = w_pad.at[:, 1, 1, Cin].set(b_fused)          # bias on the ones-row
    # kernel builds xcol kw-major (left | center | right), kh inside, CinP rows
    w_fused = jnp.transpose(w_pad, (0, 2, 1, 3)).reshape(Cout, K)

    # ---- per-lane border-validity masks (replaces the zero-padded frame) ----
    p = jnp.arange(L, dtype=jnp.int32)
    col = p % W
    masks = jnp.stack([
        col >= 1,              # left neighbour exists
        col <= W - 2,          # right neighbour exists
        p >= W,                # row above exists
        p < (H - 1) * W,       # row below exists
    ]).astype(jnp.float32)                               # (4, L)

    B = _choose_images_per_step(N)
    grid = (N // B,)

    # Raise the scoped-VMEM limit only when blocks get big (stay < v7x's 64 MiB).
    est = 4 * (2 * B * Cin * L + 2 * B * Cout * L + 2 * Cout * K + 4 * K * L)
    vmem_limit = None
    if est > (12 << 20):
        vmem_limit = int(min(max(2 * est, 32 << 20), 56 << 20))
    # TODO(synk): for images where a single (Cin, H*W) block no longer fits VMEM
    # (esp. v7x's 64 MiB), add a spatial grid axis tiling rows with a 1-row halo.

    kernel = functools.partial(_seponet_kernel, img_w=W, cin=Cin, cinp=CinP,
                               n_imgs=B)

    out_flat = pl.pallas_call(
        kernel,
        out_shape=jax.ShapeDtypeStruct((N, Cout, L), jnp.float32),
        grid_spec=pltpu.PrefetchScalarGridSpec(
            num_scalar_prefetch=0,
            grid=grid,
            in_specs=[
                pl.BlockSpec((B, Cin, L), lambda g: (g, 0, 0)),
                pl.BlockSpec((Cout, K), lambda g: (0, 0)),
                pl.BlockSpec((4, L), lambda g: (0, 0)),
            ],
            out_specs=pl.BlockSpec((B, Cout, L), lambda g: (g, 0, 0)),
        ),
        compiler_params=pltpu.CompilerParams(
            dimension_semantics=("parallel",),
            vmem_limit_bytes=vmem_limit,
        ),
    )(x_flat, w_fused, masks)

    out = out_flat[:, :, :HW] if L != HW else out_flat
    return out.reshape(N, Cout, H, W)


def _reference_forward(x_nchw, w_dw, b_dw, w_pw, b_pw):
    """Pure-JAX reference mirroring the PyTorch module."""
    Cin = x_nchw.shape[1]
    y = jax.lax.conv_general_dilated(
        x_nchw, w_dw, window_strides=(1, 1), padding=((1, 1), (1, 1)),
        feature_group_count=Cin,
        dimension_numbers=("NCHW", "OIHW", "NCHW"))
    y = y + b_dw[None, :, None, None]
    z = jax.lax.conv_general_dilated(
        y, w_pw, window_strides=(1, 1), padding="VALID",
        dimension_numbers=("NCHW", "OIHW", "NCHW"))
    z = z + b_pw[None, :, None, None]
    return z


if __name__ == "__main__":
    # Small shapes consistent with the module: batch=2, in_channels=4,
    # out_channels=8 (multiple of in_channels), spatial 16x16.
    N, Cin, H, W = 2, 4, 16, 16
    Cout = 8

    key = jax.random.PRNGKey(0)
    k_x, k_wd, k_bd, k_wp, k_bp = jax.random.split(key, 5)

    x = jax.random.normal(k_x, (N, Cin, H, W), dtype=jnp.float32)
    # Deterministic synthetic params (shapes match the nn.Conv2d parameters).
    w_dw = jax.random.normal(k_wd, (Cout, 1, 3, 3), dtype=jnp.float32) * 0.3
    b_dw = jax.random.normal(k_bd, (Cout,), dtype=jnp.float32) * 0.1
    w_pw = jax.random.normal(k_wp, (Cout, Cout, 1, 1), dtype=jnp.float32) * 0.3
    b_pw = jax.random.normal(k_bp, (Cout,), dtype=jnp.float32) * 0.1

    out = jax.block_until_ready(seponet_forward(x, w_dw, b_dw, w_pw, b_pw))
    ref = jax.block_until_ready(_reference_forward(x, w_dw, b_dw, w_pw, b_pw))

    assert out.shape == (N, Cout, H, W)
    assert jnp.allclose(out, ref, atol=1e-4, rtol=1e-4), "mismatch vs reference"

    print("KERNEL_OK")
</pallas_src>

<mosaic_0001>
module attributes {stable_mosaic.version = 11 : i64} {
  func.func @_seponet_kernel(%arg0: i32, %arg1: memref<1x4x256xf32, #tpu.memory_space<vmem>>, %arg2: memref<8x72xf32, #tpu.memory_space<vmem>>, %arg3: memref<4x256xf32, #tpu.memory_space<vmem>>, %arg4: memref<1x8x256xf32, #tpu.memory_space<vmem>>) attributes {dimension_semantics = [#tpu.dimension_semantics<parallel>], iteration_bounds = array<i64: 2>, scalar_prefetch = 0 : i64, scratch_operands = 0 : i64, tpu.core_type = #tpu.core_type<tc>, window_params = [{transform_indices = @transform_0, window_bounds = array<i64: 1, 4, 256>}, {pipeline_mode = #tpu.pipeline_mode<synchronous>, transform_indices = @transform_1, window_bounds = array<i64: 8, 72>}, {pipeline_mode = #tpu.pipeline_mode<synchronous>, transform_indices = @transform_2, window_bounds = array<i64: 4, 256>}, {transform_indices = @transform_3, window_bounds = array<i64: 1, 8, 256>}]} {
    %c0 = arith.constant 0 : index
    %c0_0 = arith.constant 0 : index
    %0 = vector.load %arg3[%c0, %c0_0] : memref<4x256xf32, #tpu.memory_space<vmem>>, vector<1x256xf32>
    %c1 = arith.constant 1 : index
    %c0_1 = arith.constant 0 : index
    %1 = vector.load %arg3[%c1, %c0_1] : memref<4x256xf32, #tpu.memory_space<vmem>>, vector<1x256xf32>
    %c2 = arith.constant 2 : index
    %c0_2 = arith.constant 0 : index
    %2 = vector.load %arg3[%c2, %c0_2] : memref<4x256xf32, #tpu.memory_space<vmem>>, vector<1x256xf32>
    %c3 = arith.constant 3 : index
    %c0_3 = arith.constant 0 : index
    %3 = vector.load %arg3[%c3, %c0_3] : memref<4x256xf32, #tpu.memory_space<vmem>>, vector<1x256xf32>
    %cst = arith.constant 1.000000e+00 : f32
    %4 = vector.broadcast %cst : f32 to vector<1x256xf32>
    %cst_4 = arith.constant 0.000000e+00 : f32
    %5 = vector.broadcast %cst_4 : f32 to vector<3x256xf32>
    %6 = tpu.concatenate %4, %5 in 0 : vector<1x256xf32>, vector<3x256xf32> -> vector<4x256xf32>
    %c0_5 = arith.constant 0 : index
    %c0_6 = arith.constant 0 : index
    %c0_7 = arith.constant 0 : index
    %7 = vector.load %arg1[%c0_5, %c0_6, %c0_7] : memref<1x4x256xf32, #tpu.memory_space<vmem>>, vector<1x4x256xf32>
    %8 = vector.shape_cast %7 : vector<1x4x256xf32> to vector<4x256xf32>
    %9 = tpu.concatenate %8, %6 in 0 : vector<4x256xf32>, vector<4x256xf32> -> vector<8x256xf32>
    %c16_i32 = arith.constant 16 : i32
    %10 = tpu.dynamic_rotate %9 by %c16_i32 dim 1 : vector<8x256xf32>, i32 -> vector<8x256xf32>
    %11 = vector.broadcast %2 : vector<1x256xf32> to vector<8x256xf32>
    %12 = arith.mulf %10, %11 : vector<8x256xf32>
    %c240_i32 = arith.constant 240 : i32
    %13 = tpu.dynamic_rotate %9 by %c240_i32 dim 1 : vector<8x256xf32>, i32 -> vector<8x256xf32>
    %14 = vector.broadcast %3 : vector<1x256xf32> to vector<8x256xf32>
    %15 = arith.mulf %13, %14 : vector<8x256xf32>
    %16 = tpu.concatenate %12, %9, %15 in 0 : vector<8x256xf32>, vector<8x256xf32>, vector<8x256xf32> -> vector<24x256xf32>
    %c1_i32 = arith.constant 1 : i32
    %17 = tpu.dynamic_rotate %16 by %c1_i32 dim 1 : vector<24x256xf32>, i32 -> vector<24x256xf32>
    %18 = vector.broadcast %0 : vector<1x256xf32> to vector<24x256xf32>
    %19 = arith.mulf %17, %18 : vector<24x256xf32>
    %c255_i32 = arith.constant 255 : i32
    %20 = tpu.dynamic_rotate %16 by %c255_i32 dim 1 : vector<24x256xf32>, i32 -> vector<24x256xf32>
    %21 = vector.broadcast %1 : vector<1x256xf32> to vector<24x256xf32>
    %22 = arith.mulf %20, %21 : vector<24x256xf32>
    %23 = tpu.concatenate %19, %16, %22 in 0 : vector<24x256xf32>, vector<24x256xf32>, vector<24x256xf32> -> vector<72x256xf32>
    %c0_8 = arith.constant 0 : index
    %c0_9 = arith.constant 0 : index
    %24 = vector.load %arg2[%c0_8, %c0_9] : memref<8x72xf32, #tpu.memory_space<vmem>>, vector<8x72xf32>
    %cst_10 = arith.constant dense<0.000000e+00> : vector<8x256xf32>
    %25 = tpu.matmul %24, %23, %cst_10 {dimension_numbers = #tpu.dot_dimension_numbers<[1], [0], [0], [1], [0, 0, 1, 1], [], []>} : vector<8x72xf32>, vector<72x256xf32>, vector<8x256xf32> -> vector<8x256xf32>
    %c0_11 = arith.constant 0 : index
    %c0_12 = arith.constant 0 : index
    %c0_13 = arith.constant 0 : index
    %26 = vector.load %arg4[%c0_11, %c0_12, %c0_13] : memref<1x8x256xf32, #tpu.memory_space<vmem>>, vector<1x8x256xf32>
    %27 = vector.shape_cast %26 : vector<1x8x256xf32> to vector<8x256xf32>
    %28 = vector.shape_cast %25 : vector<8x256xf32> to vector<1x8x256xf32>
    tpu.vector_store %arg4[%c0_11, %c0_12, %c0_13], %28 {strides = array<i32>} : memref<1x8x256xf32, #tpu.memory_space<vmem>>, vector<1x8x256xf32>,
    return
  }
  func.func @transform_0(%arg0: i32) -> (i32, i32, i32) {
    %c0_i32 = arith.constant 0 : i32
    %c0_i32_0 = arith.constant 0 : i32
    %c0_i32_1 = arith.constant 0 : i32
    return %arg0, %c0_i32, %c0_i32_0 : i32, i32, i32
  }
  func.func @transform_1(%arg0: i32) -> (i32, i32) {
    %c0_i32 = arith.constant 0 : i32
    %c0_i32_0 = arith.constant 0 : i32
    %c0_i32_1 = arith.constant 0 : i32
    return %c0_i32, %c0_i32_0 : i32, i32
  }
  func.func @transform_2(%arg0: i32) -> (i32, i32) {
    %c0_i32 = arith.constant 0 : i32
    %c0_i32_0 = arith.constant 0 : i32
    %c0_i32_1 = arith.constant 0 : i32
    return %c0_i32, %c0_i32_0 : i32, i32
  }
  func.func @transform_3(%arg0: i32) -> (i32, i32, i32) {
    %c0_i32 = arith.constant 0 : i32
    %c0_i32_0 = arith.constant 0 : i32
    %c0_i32_1 = arith.constant 0 : i32
    return %arg0, %c0_i32, %c0_i32_0 : i32, i32, i32
  }
}

</mosaic_0001>

<bundles_post_ra>
// kernel: seponet_forward.1
= control target key start
LH: loop header
LB: loop body
LE: loop exit
PB: predicated region body
PF: predicated region fallthrough
CT: control target
= control target key end

     0   :  { %s517_s12 = smov 0   ;;  %s619_s0 = inlined_call_operand.vmem [shape: f32[2,4,256], index: 0, kind: input, shape index: {}]   ;;  %s620_s1 = inlined_call_operand.vmem [shape: f32[8,72], index: 1, kind: input, shape index: {}]   ;;  %s621_s2 = inlined_call_operand.vmem [shape: f32[4,256], index: 2, kind: input, shape index: {}]   ;;  %s622_s3 = inlined_call_operand.vmem [shape: f32[2,8,256], index: 3, kind: output, shape index: {}]  }
   0x1 LB: > { %s437_s13 = sadd.s32 4294967295, %s490_s12   ;;  %p441_p0 = scmp.ge.s32.totalorder %s490_s12, 1  ;;  %s490_s12 = sphi %s517_s12, %s13_s12  }
   0x2   : > { %p137_p1 = scmp.lt.s32.totalorder %s490_s12, 3 }
   0x4   : > { %p138_p2 = pnand %p441_p0, %p137_p1 }
   0x5   : > { %p161_p3 = scmp.lt.s32.totalorder (!%p138_p2), %s437_s13, 1  ;;  %vm178_vm0 = vcmask (!%p138_p2), 1040384   ;;  %v492_v0 = vmov (!%p138_p2), 0.0   ;;  %vm187_vm1 = vcmask (!%p138_p2), 1043456   ;;  %s493_s18 = smov (!%p138_p2), 112   ;;  %v194_v7 = vlaneseq (!%p138_p2) }
   0x6   : > { %141 = sbr.rel (%p138_p2) target bundleno = 496 (0x1f0), region = 32  ;;  %v179_v1 = vsel (!%p138_p2), %vm178_vm0, 1.0, %v492_v0  ;;  %373 = vmatprep.mubr.f32.mxu0 (!%p138_p2), %v492_v0  ;;  %s494_s19 = smov (!%p138_p2), 16   ;;  %v448_v12 = vld [vmem:[%s621_s2 + $0x3] ss:$4 sm:$0x3] (!%p138_p2) }
   0x7   : > { %v185_v2 = vrot.slane (!%p138_p2), %v179_v1, 4  ;;  %s495_s20 = smov (!%p138_p2), 1   ;;  %v201_v8 = vshrl.u32 (!%p138_p2), %v194_v7, 7  ;;  %v543_v9 = vand.u32 (!%p138_p2), 127, %v194_v7  ;;  %s496_s25 = smov (!%p138_p2), 127   ;;  %vm305_vm6 = vcmask (!%p138_p2), 588800  }
   0x8   : > { %v447_v13 = vld [vmem:[%s621_s2 + $0x2] ss:$4 sm:$0x3] (!%p138_p2)  ;;  %v171_v32 = vld [vmem:[%s621_s2] ss:$4 sm:$0x3] (!%p138_p2) }
   0x9   : > { %v545_v10 = vsub.s32 (!%p138_p2), 0, %v201_v8  ;;  %v547_v11 = vsub.s32 (!%p138_p2), 1, %v201_v8  ;;  %vm216_vm2 = vcmp.lt.s32.totalorder (!%p138_p2), %v543_v9, 112  ;;  %vm196_vm3 = vcmp.lt.s32.totalorder (!%p138_p2), %v543_v9, 16 }
   0xa   : > { %vm244_vm4 = vcmp.lt.s32.totalorder (!%p138_p2), %v543_v9, 1  ;;  %v446_v54 = vld [vmem:[%s621_s2 + $0x1] ss:$4 sm:$0x3] (!%p138_p2)  ;;  %vm280_vm5 = vcmp.lt.s32.totalorder (!%p138_p2), %v543_v9, 127 }
   0xb   : > { %v227_v16 = vrot.slane (!%p138_p2), %v448_v12, %v547_v11  ;;  %v203_v17 = vrot.slane (!%p138_p2), %v447_v13, %v545_v10  ;;  %v207_v23 = vrot.slane (!%p138_p2), %v447_v13, %v547_v11  ;;  %v223_v26 = vrot.slane (!%p138_p2), %v448_v12, %v545_v10 }
   0xc   : > { %v255_v34 = vrot.slane (!%p138_p2), %v171_v32, %v545_v10  ;;  %v259_v36 = vrot.slane (!%p138_p2), %v171_v32, %v547_v11  ;;  %v291_v58 = vrot.slane (!%p138_p2), %v446_v54, %v545_v10  ;;  %v295_v59 = vrot.slane (!%p138_p2), %v446_v54, %v547_v11 }
   0xd   : > { %s624_s13 = smov (!%p161_p3, %s437_s13), 1 }
   0xe   : > { %s452_s14 = sshll.u32 %s624_s13, 3  ;;  %s453_s5 = sshll.u32 %s624_s13, 4 }
   0xf   : > { %s165_s17 = scalar_lea.vmem %s619_s0, %s452_s14  ;;  %s170_s8 = scalar_lea.vmem %s622_s3, %s453_s5 }
  0x10   : > { %v180_v3 = vld [vmem:[%s165_s17] sm:$0xff] }
  0x11   : > { %v531_v4 = vsel %vm187_vm1, %v180_v3, %v185_v2  ;;  %v182_v5 = vcombine.high %v180_v3, %v180_v3 }
  0x12   : > { %212 = vrot.lane.b32.xlu1 %v531_v4, %s493_s18  ;;  %190 = vrot.lane.b32.xlu0 %v531_v4, %s494_s19 }
  0x13   : > { %v535_v6 = vsel %vm187_vm1, %v182_v5, %v185_v2 }
  0x16   : > { %214 = vrot.lane.b32.xlu1 %v535_v6, %s493_s18  ;;  %192 = vrot.lane.b32.xlu0 %v535_v6, %s494_s19 }
  0x1a   : > { %234 = vrot.lane.b32.xlu1 %v531_v4, %s495_s20 }
  0x1e   : > { %240 = vrot.lane.b32.xlu1 %v535_v6, %s495_s20 }
  0x84   : > { %v213_v14 = vpop.permute.xlu1 %212  ;;  %v191_v15 = vpop.permute.xlu0 %190 }
  0x88   : > { %v215_v18 = vpop.permute.xlu1 %214  ;;  %v193_v19 = vpop.permute.xlu0 %192 }
  0x89   : > { %v218_v20 = vsel %vm216_vm2, %v215_v18, %v213_v14  ;;  %v198_v21 = vsel %vm196_vm3, %v193_v19, %v191_v15  ;;  %v197_v25 = vsel %vm196_vm3, %v191_v15, %v193_v19  ;;  %v217_v28 = vsel %vm216_vm2, %v213_v14, %v215_v18 }
  0x8a   : > { %v231_v22 = vmul.f32 %v227_v16, %v218_v20  ;;  %v210_v24 = vmul.f32 %v203_v17, %v198_v21  ;;  %v211_v27 = vmul.f32 %v207_v23, %v197_v25  ;;  %v230_v29 = vmul.f32 %v223_v26, %v217_v28  ;;  %v304_v17 = vld [vmem:[%s620_s1] sm:$0xff] }
  0x8c   : > { %242 = vrot.lane.b32.xlu1 %v231_v22, %s495_s20  ;;  %232 = vrot.lane.b32.xlu0 %v210_v24, %s495_s20  ;;  %v235_v30 = vpop.permute.xlu1 %234  ;;  %v462_v61 = vpack.c.bf16 %v231_v22, %v535_v6  ;;  %v464_v3 = vpack.c.bf16 %v230_v29, %v531_v4 }
  0x90   : > { %270 = vrot.lane.b32.xlu1 %v531_v4, %s496_s25  ;;  %238 = vrot.lane.b32.xlu0 %v211_v27, %s495_s20  ;;  %v241_v31 = vpop.permute.xlu1 %240 }
  0x91   : > { %v246_v37 = vsel %vm244_vm4, %v235_v30, %v241_v31  ;;  %v249_v38 = vsel %vm244_vm4, %v241_v31, %v235_v30 }
  0x92   : > { %v264_v42 = vmul.f32 %v255_v34, %v249_v38  ;;  %v265_v45 = vmul.f32 %v259_v36, %v246_v37 }
  0x94   : > { %276 = vrot.lane.b32.xlu1 %v535_v6, %s496_s25  ;;  %236 = vrot.lane.b32.xlu0 %v230_v29, %s495_s20 }
  0x98   : > { %278 = vrot.lane.b32.xlu1 %v231_v22, %s496_s25  ;;  %268 = vrot.lane.b32.xlu0 %v210_v24, %s496_s25 }
  0x9c   : > { %274 = vrot.lane.b32.xlu0 %v211_v27, %s496_s25 }
  0xa0   : > { %272 = vrot.lane.b32.xlu0 %v230_v29, %s496_s25 }
  0xfe   : > { %v233_v33 = vpop.permute.xlu0 %232  ;;  %v243_v35 = vpop.permute.xlu1 %242 }
 0x102   : > { %v239_v39 = vpop.permute.xlu0 %238  ;;  %v271_v46 = vpop.permute.xlu1 %270 }
 0x103   : > { %v245_v40 = vsel %vm244_vm4, %v233_v33, %v239_v39  ;;  %v248_v41 = vsel %vm244_vm4, %v239_v39, %v233_v33 }
 0x104   : > { %v262_v43 = vmul.f32 %v255_v34, %v248_v41  ;;  %v263_v44 = vmul.f32 %v259_v36, %v245_v40 }
 0x106   : > { %v237_v47 = vpop.permute.xlu0 %236  ;;  %v454_v48 = vpack.c.bf16 %v265_v45, %v263_v44  ;;  %v456_v49 = vpack.c.bf16 %v264_v42, %v262_v43  ;;  %v277_v60 = vpop.permute.xlu1 %276 }
 0x107   : > { %v247_v50 = vsel %vm244_vm4, %v237_v47, %v243_v35  ;;  %v250_v51 = vsel %vm244_vm4, %v243_v35, %v237_v47  ;;  %v282_v62 = vsel %vm280_vm5, %v271_v46, %v277_v60  ;;  %v285_v63 = vsel %vm280_vm5, %v277_v60, %v271_v46 }
 0x108   : > { %v266_v52 = vmul.f32 %v255_v34, %v250_v51  ;;  %v267_v53 = vmul.f32 %v259_v36, %v247_v50  ;;  %455 = vmatprep.subr.bf16.mxu0 %v454_v48  ;;  %v300_v5 = vmul.f32 %v291_v58, %v282_v62  ;;  %v301_v7 = vmul.f32 %v295_v59, %v285_v63 }
 0x109   : > { %457 = vmatpush1.bf16.msra.mxu0 %v456_v49 }
 0x10a   : > { %v269_v55 = vpop.permute.xlu0 %268  ;;  %v458_v56 = vpack.c.bf16 %v211_v27, %v267_v53  ;;  %v460_v57 = vpack.c.bf16 %v210_v24, %v266_v52  ;;  %v279_v10 = vpop.permute.xlu1 %278 }
 0x10c   : > { %459 = vmatprep.subr.bf16.mxu0 %v458_v56 }
 0x10d   : > { %461 = vmatpush1.bf16.msra.mxu0 %v460_v57 }
 0x10e   : > { %463 = vmatprep.subr.bf16.mxu0 %v462_v61  ;;  %v275_v0 = vpop.permute.xlu0 %274 }
 0x10f   : > { %v281_v1 = vsel %vm280_vm5, %v269_v55, %v275_v0  ;;  %v284_v2 = vsel %vm280_vm5, %v275_v0, %v269_v55 }
 0x110   : > { %v298_v6 = vmul.f32 %v291_v58, %v281_v1  ;;  %v299_v8 = vmul.f32 %v295_v59, %v284_v2 }
 0x111   : > { %465 = vmatpush1.bf16.msra.mxu0 %v464_v3 }
 0x112   : > { %v273_v11 = vpop.permute.xlu0 %272  ;;  %v466_v12 = vpack.c.bf16 %v301_v7, %v299_v8  ;;  %v468_v13 = vpack.c.bf16 %v300_v5, %v298_v6 }
 0x113   : > { %v286_v14 = vsel %vm280_vm5, %v279_v10, %v273_v11  ;;  %v283_v15 = vsel %vm280_vm5, %v273_v11, %v279_v10 }
 0x114   : > { %v303_v16 = vmul.f32 %v295_v59, %v286_v14  ;;  %467 = vmatprep.subr.bf16.mxu0 %v466_v12  ;;  %v302_v4 = vmul.f32 %v291_v58, %v283_v15 }
 0x115   : > { %469 = vmatpush1.bf16.msra.mxu0 %v468_v13 }
 0x116   : > { %325 = vmatprep.subr.mxu0 %v303_v16 }
 0x119   : > { %326 = vmatpush1.msra.mxu0 %v302_v4 }
 0x11a   : > { %449 = vmatmul.mubr.msk.f32.vlgmr.msra.gmra.mrb[0].mxu0 %vm305_vm6, %v304_v17 }
 0x1ed   : > { %v375_v18 = vpop.f32.mrb[0].mxu0 }
 0x1ee   : > { %380 = vst [vmem:[%s170_s8] sm:$0xff] %v375_v18  ;;  %v377_v9 = vpop.f32.mrb[1].mxu0 }
 0x1ef   : > { %381 = vst [vmem:[%s170_s8 + $0x8] sm:$0xff] %v377_v9 }
 0x1f0 PF: > { %s13_s12 = sadd.s32 1, %s490_s12  }
 0x1f1   : > { %p10_p4 = scmp.ge.s32.totalorder %s13_s12, 4  }
 0x1f3   :  { %12 = sbr.rel (!%p10_p4) target bundleno = 1 (0x1), region = 65 }

</bundles_post_ra>
